<compile_context>
chip_gen: v7x
topology: tpu7x:2x2x1
jax: 0.10.0
libtpu: 0.0.40
codegen_flags: <defaults>
</compile_context>

<pallas_src>
import math
import functools

import jax
import jax.numpy as jnp
import numpy as np
from jax import lax
from jax.experimental import pallas as pl
from jax.experimental.pallas import tpu as pltpu


# ----------------------------- config ---------------------------------------
class Config:
    hidden_size = 32
    intermediate_size = 128          # 4 * hidden, like BERT
    hidden_act = "gelu"


# ------------------------- in-kernel activations -----------------------------
_INV_SQRT2 = 1.0 / math.sqrt(2.0)


def _erf_approx(x):
    # Abramowitz & Stegun 7.1.26 (max abs error ~1.5e-7).
    # 1/(1+p|x|) uses the EUP approximate reciprocal + one Newton step (2 cheap VALU ops)
    # instead of a full divide; exp() already lowers to the EUP slot.
    p = 0.3275911
    a1, a2, a3, a4, a5 = 0.254829592, -0.284496736, 1.421413741, -1.453152027, 1.061405429
    ax = jnp.abs(x)
    d = 1.0 + p * ax
    t = pl.reciprocal(d, approx=True)
    t = t * (2.0 - d * t)                           # Newton refinement -> ~f32-accurate 1/d
    poly = ((((a5 * t + a4) * t + a3) * t + a2) * t + a1) * t
    pos = 1.0 - poly * jnp.exp(-(ax * ax))
    return jnp.where(x >= 0, pos, -pos)


def _gelu(x):          # exact-BERT gelu: x * 0.5 * (1 + erf(x / sqrt(2)))
    return 0.5 * x * (1.0 + _erf_approx(x * _INV_SQRT2))


def _gelu_new(x):      # tanh-based gelu (all transcendentals on the EUP)
    c = math.sqrt(2.0 / math.pi)
    return 0.5 * x * (1.0 + jnp.tanh(c * (x + 0.044715 * x * x * x)))


def _relu(x):
    return jnp.maximum(x, 0.0)


def _swish(x):
    return x * jax.nn.sigmoid(x)


def _mish(x):
    return x * jnp.tanh(jnp.log1p(jnp.exp(x)))


_ACT2FN = {"gelu": _gelu, "relu": _relu, "swish": _swish, "gelu_new": _gelu_new, "mish": _mish}


# ----------------------------- Pallas kernel ---------------------------------
def intermediate_kernel(x_ref, w_ref, b_ref, o_ref, *, act_fn, precision):
    # x: (tm, H), w: (tn, H) in native nn.Linear layout, b: (1, tn) -> o: (tm, tn)
    y = lax.dot_general(
        x_ref[...], w_ref[...],
        dimension_numbers=(((1,), (1,)), ((), ())),      # contract H with H (no transpose)
        preferred_element_type=jnp.float32,
        precision=precision,
    )
    y = y + b_ref[...]                                   # bias broadcast over rows (f32)
    o_ref[...] = act_fn(y).astype(o_ref.dtype)


# ----------------------------- wrapper ---------------------------------------
def _round_up(x, m):
    return ((x + m - 1) // m) * m


def _pick_col_tile(I, H, w_itemsize, weight_budget_bytes):
    """Largest 128-multiple column tile dividing I whose double-buffered weight slab fits."""
    if I % 128 != 0:
        return I                                         # block must equal the full dim then
    for cand in range(I, 127, -128):
        if I % cand == 0 and 2 * cand * H * w_itemsize <= weight_budget_bytes:
            return cand
    return 128


def quant_bert_intermediate(hidden_states, weight, bias, act="gelu",
                            compute_dtype=jnp.bfloat16, out_dtype=jnp.float32):
    """hidden_states: (B, S, H); weight: (I, H) (nn.Linear layout); bias: (I,) -> (B, S, I)."""
    B, S, H = hidden_states.shape
    I = weight.shape[0]
    M = B * S

    # bf16-in / f32-acc by default (MXU fast path, halves x/W DMA bytes).
    # TODO(synk): in a real model the weight cast belongs at parameter-load time, not per call.
    x = hidden_states.reshape(M, H).astype(compute_dtype)
    w = weight.astype(compute_dtype)                      # native (I, H); no transpose pass
    b2 = bias.reshape(1, I).astype(jnp.float32)

    # Row tile: sublane/MXU aligned; pad M so every tile is full (no giant fallback block).
    tm = min(512, _round_up(M, 8))
    M_pad = _round_up(M, tm)
    if M_pad != M:
        x = jnp.pad(x, ((0, M_pad - M), (0, 0)))

    # Column tile: whole weight resident when its double-buffered slab fits the budget
    # (true for BERT-base/large in bf16); otherwise split on 128-lane multiples.
    w_itemsize = np.dtype(compute_dtype).itemsize
    tn = _pick_col_tile(I, H, w_itemsize, weight_budget_bytes=24 << 20)

    precision = (lax.Precision.HIGHEST
                 if np.dtype(compute_dtype) == np.dtype(np.float32) else None)
    kernel = functools.partial(intermediate_kernel, act_fn=_ACT2FN[act], precision=precision)

    cost = pl.CostEstimate(
        flops=2 * M_pad * H * I,
        transcendentals=M_pad * I,                       # ~1 exp/tanh per output element
        bytes_accessed=(M_pad * H + I * H) * w_itemsize
                       + I * 4 + M_pad * I * np.dtype(out_dtype).itemsize,
    )

    out = pl.pallas_call(
        kernel,
        out_shape=jax.ShapeDtypeStruct((M_pad, I), out_dtype),
        # Columns OUTER, rows INNER: weight block index constant over the inner loop, so
        # the weight is DMA'd once per column block (once total when tn == I).
        grid=(I // tn, M_pad // tm),
        in_specs=[
            pl.BlockSpec((tm, H), lambda j, i: (i, 0)),   # activations stream over rows
            pl.BlockSpec((tn, H), lambda j, i: (j, 0)),   # weight: resident across row steps
            pl.BlockSpec((1, tn), lambda j, i: (0, j)),   # bias
        ],
        out_specs=pl.BlockSpec((tm, tn), lambda j, i: (i, j)),   # lane-dense output tile
        compiler_params=pltpu.CompilerParams(
            dimension_semantics=("parallel", "parallel"),
            vmem_limit_bytes=48 * 1024 * 1024,
        ),
        cost_estimate=cost,
    )(x, w, b2)

    if M_pad != M:
        out = out[:M]
    return out.reshape(B, S, I)


# ----------------------------- reference (pure JAX) ---------------------------
def reference(hidden_states, weight, bias):
    B, S, H = hidden_states.shape
    y = jnp.dot(hidden_states.reshape(-1, H), weight.T,
                precision=lax.Precision.HIGHEST) + bias
    y = y * 0.5 * (1.0 + lax.erf(y * _INV_SQRT2))         # exact erf-based gelu
    return y.reshape(B, S, -1)


# ----------------------------- main -------------------------------------------
if __name__ == "__main__":
    cfg = Config()
    B, S, H, I = 2, 8, cfg.hidden_size, cfg.intermediate_size

    key = jax.random.PRNGKey(0)
    k_hs, k_w, k_b = jax.random.split(key, 3)

    hidden_states = jax.random.normal(k_hs, (B, S, H), dtype=jnp.float32)
    bound = 1.0 / math.sqrt(H)                            # nn.Linear default init range
    weight = jax.random.uniform(k_w, (I, H), jnp.float32, minval=-bound, maxval=bound)
    bias = jax.random.uniform(k_b, (I,), jnp.float32, minval=-bound, maxval=bound)

    # Exact f32 nn.Linear semantics (precision=HIGHEST) vs. exact erf-gelu reference.
    out_f32 = quant_bert_intermediate(hidden_states, weight, bias, act=cfg.hidden_act,
                                      compute_dtype=jnp.float32)
    out_f32 = jax.block_until_ready(out_f32)
    ref_f32 = reference(hidden_states, weight, bias)
    assert out_f32.shape == (B, S, I)
    assert np.allclose(np.asarray(out_f32), np.asarray(ref_f32), atol=1e-4, rtol=1e-4)

    # Default fast path: bf16 inputs / f32 accumulation. Compare against a reference built
    # from the same bf16-rounded operands (apples-to-apples for the MXU fast path).
    out_bf16 = quant_bert_intermediate(hidden_states, weight, bias, act=cfg.hidden_act)
    out_bf16 = jax.block_until_ready(out_bf16)
    hs_r = hidden_states.astype(jnp.bfloat16).astype(jnp.float32)
    w_r = weight.astype(jnp.bfloat16).astype(jnp.float32)
    ref_bf16 = reference(hs_r, w_r, bias)
    assert out_bf16.shape == (B, S, I)
    assert np.allclose(np.asarray(out_bf16), np.asarray(ref_bf16), atol=1e-3, rtol=1e-3)

    print("KERNEL_OK")
</pallas_src>

<mosaic_0001>
module attributes {stable_mosaic.version = 11 : i64} {
  func.func @intermediate_kernel(%arg0: i32, %arg1: i32, %arg2: memref<16x32xf32, #tpu.memory_space<vmem>>, %arg3: memref<128x32xf32, #tpu.memory_space<vmem>>, %arg4: memref<1x128xf32, #tpu.memory_space<vmem>>, %arg5: memref<16x128xf32, #tpu.memory_space<vmem>>) attributes {dimension_semantics = [#tpu.dimension_semantics<parallel>, #tpu.dimension_semantics<parallel>], iteration_bounds = array<i64: 1, 1>, scalar_prefetch = 0 : i64, scratch_operands = 0 : i64, tpu.core_type = #tpu.core_type<tc>, window_params = [{transform_indices = @transform_0, window_bounds = array<i64: 16, 32>}, {transform_indices = @transform_1, window_bounds = array<i64: 128, 32>}, {transform_indices = @transform_2, window_bounds = array<i64: 1, 128>}, {transform_indices = @transform_3, window_bounds = array<i64: 16, 128>}]} {
    %c0 = arith.constant 0 : index
    %c0_0 = arith.constant 0 : index
    %0 = vector.load %arg2[%c0, %c0_0] : memref<16x32xf32, #tpu.memory_space<vmem>>, vector<16x32xf32>
    %c0_1 = arith.constant 0 : index
    %c0_2 = arith.constant 0 : index
    %1 = vector.load %arg3[%c0_1, %c0_2] : memref<128x32xf32, #tpu.memory_space<vmem>>, vector<128x32xf32>
    %cst = arith.constant dense<0.000000e+00> : vector<16x128xf32>
    %2 = tpu.matmul %0, %1, %cst {dimension_numbers = #tpu.dot_dimension_numbers<[1], [1], [0], [0], [0, 0, 1, 0], [], []>, precision = #tpu.contract_precision<fp32>} : vector<16x32xf32>, vector<128x32xf32>, vector<16x128xf32> -> vector<16x128xf32>
    %c0_3 = arith.constant 0 : index
    %c0_4 = arith.constant 0 : index
    %3 = vector.load %arg4[%c0_3, %c0_4] : memref<1x128xf32, #tpu.memory_space<vmem>>, vector<1x128xf32>
    %4 = vector.broadcast %3 : vector<1x128xf32> to vector<16x128xf32>
    %5 = arith.addf %2, %4 : vector<16x128xf32>
    %cst_5 = arith.constant 5.000000e-01 : f32
    %6 = vector.broadcast %cst_5 : f32 to vector<16x128xf32>
    %7 = arith.mulf %6, %5 : vector<16x128xf32>
    %cst_6 = arith.constant 0.707106769 : f32
    %8 = vector.broadcast %cst_6 : f32 to vector<16x128xf32>
    %9 = arith.mulf %5, %8 : vector<16x128xf32>
    %10 = math.absf %9 : vector<16x128xf32>
    %cst_7 = arith.constant 0.327591091 : f32
    %11 = vector.broadcast %cst_7 : f32 to vector<16x128xf32>
    %12 = arith.mulf %11, %10 : vector<16x128xf32>
    %cst_8 = arith.constant 1.000000e+00 : f32
    %13 = vector.broadcast %cst_8 : f32 to vector<16x128xf32>
    %14 = arith.addf %13, %12 : vector<16x128xf32>
    %15 = tpu.reciprocal %14 {approx = true} : vector<16x128xf32> -> vector<16x128xf32>
    %16 = arith.mulf %14, %15 : vector<16x128xf32>
    %cst_9 = arith.constant 2.000000e+00 : f32
    %17 = vector.broadcast %cst_9 : f32 to vector<16x128xf32>
    %18 = arith.subf %17, %16 : vector<16x128xf32>
    %19 = arith.mulf %15, %18 : vector<16x128xf32>
    %cst_10 = arith.constant 1.06140542 : f32
    %20 = vector.broadcast %cst_10 : f32 to vector<16x128xf32>
    %21 = arith.mulf %20, %19 : vector<16x128xf32>
    %cst_11 = arith.constant -1.45315206 : f32
    %22 = vector.broadcast %cst_11 : f32 to vector<16x128xf32>
    %23 = arith.addf %21, %22 : vector<16x128xf32>
    %24 = arith.mulf %23, %19 : vector<16x128xf32>
    %cst_12 = arith.constant 1.42141378 : f32
    %25 = vector.broadcast %cst_12 : f32 to vector<16x128xf32>
    %26 = arith.addf %24, %25 : vector<16x128xf32>
    %27 = arith.mulf %26, %19 : vector<16x128xf32>
    %cst_13 = arith.constant -0.284496725 : f32
    %28 = vector.broadcast %cst_13 : f32 to vector<16x128xf32>
    %29 = arith.addf %27, %28 : vector<16x128xf32>
    %30 = arith.mulf %29, %19 : vector<16x128xf32>
    %cst_14 = arith.constant 0.254829586 : f32
    %31 = vector.broadcast %cst_14 : f32 to vector<16x128xf32>
    %32 = arith.addf %30, %31 : vector<16x128xf32>
    %33 = arith.mulf %32, %19 : vector<16x128xf32>
    %34 = arith.mulf %10, %10 : vector<16x128xf32>
    %cst_15 = arith.constant 0.000000e+00 : f32
    %35 = vector.broadcast %cst_15 : f32 to vector<16x128xf32>
    %36 = arith.subf %35, %34 : vector<16x128xf32>
    %37 = math.exp %36 : vector<16x128xf32>
    %38 = arith.mulf %33, %37 : vector<16x128xf32>
    %cst_16 = arith.constant 1.000000e+00 : f32
    %39 = vector.broadcast %cst_16 : f32 to vector<16x128xf32>
    %40 = arith.subf %39, %38 : vector<16x128xf32>
    %cst_17 = arith.constant 0.000000e+00 : f32
    %41 = vector.broadcast %cst_17 : f32 to vector<16x128xf32>
    %42 = arith.cmpf oge, %9, %41 : vector<16x128xf32>
    %cst_18 = arith.constant 0.000000e+00 : f32
    %43 = vector.broadcast %cst_18 : f32 to vector<16x128xf32>
    %44 = arith.subf %43, %40 : vector<16x128xf32>
    %45 = arith.select %42, %40, %44 : vector<16x128xi1>, vector<16x128xf32>
    %cst_19 = arith.constant 1.000000e+00 : f32
    %46 = vector.broadcast %cst_19 : f32 to vector<16x128xf32>
    %47 = arith.addf %46, %45 : vector<16x128xf32>
    %48 = arith.mulf %7, %47 : vector<16x128xf32>
    %c0_20 = arith.constant 0 : index
    %c0_21 = arith.constant 0 : index
    %49 = vector.load %arg5[%c0_20, %c0_21] : memref<16x128xf32, #tpu.memory_space<vmem>>, vector<16x128xf32>
    tpu.vector_store %arg5[%c0_20, %c0_21], %48 {strides = array<i32>} : memref<16x128xf32, #tpu.memory_space<vmem>>, vector<16x128xf32>,
    return
  }
  func.func @transform_0(%arg0: i32, %arg1: i32) -> (i32, i32) {
    %c0_i32 = arith.constant 0 : i32
    %c0_i32_0 = arith.constant 0 : i32
    return %arg1, %c0_i32 : i32, i32
  }
  func.func @transform_1(%arg0: i32, %arg1: i32) -> (i32, i32) {
    %c0_i32 = arith.constant 0 : i32
    %c0_i32_0 = arith.constant 0 : i32
    return %arg0, %c0_i32 : i32, i32
  }
  func.func @transform_2(%arg0: i32, %arg1: i32) -> (i32, i32) {
    %c0_i32 = arith.constant 0 : i32
    %c0_i32_0 = arith.constant 0 : i32
    return %c0_i32, %arg0 : i32, i32
  }
  func.func @transform_3(%arg0: i32, %arg1: i32) -> (i32, i32) {
    %c0_i32 = arith.constant 0 : i32
    return %arg1, %arg0 : i32, i32
  }
}

</mosaic_0001>

<bundles_post_ra>
// kernel: tpu_custom_call.1
= control target key start
LH: loop header
LB: loop body
LE: loop exit
PB: predicated region body
PF: predicated region fallthrough
CT: control target
= control target key end

     0   :  { %vm40_vm0 = vcmask 261120   ;;  %s1721_s0 = inlined_call_operand.vmem [shape: f32[16,32], index: 0, kind: input, shape index: {}]   ;;  %s1722_s1 = inlined_call_operand.vmem [shape: f32[128,32], index: 1, kind: input, shape index: {}]   ;;  %s1723_s2 = inlined_call_operand.vmem [shape: f32[1,128], index: 2, kind: input, shape index: {}]   ;;  %s1724_s3 = inlined_call_operand.hbm [shape: f32[16,128], index: 3, kind: output, shape index: {}]  }
   0x1   :  { %v17_v0 = vld [vmem:[%s1722_s1] sm:$0xff]  ;;  %v18_v1 = vld [vmem:[%s1722_s1 + $0x8] sm:$0xff]  ;;  %v19_v2 = vld [vmem:[%s1722_s1 + $0x10] sm:$0xff] }
   0x2   :  { %v48_v3 = vsel %vm40_vm0, %v17_v0, 0  ;;  %v51_v4 = vsel %vm40_vm0, %v18_v1, 0  ;;  %v20_v5 = vld [vmem:[%s1722_s1 + $0x18] sm:$0xff]  ;;  %v54_v6 = vsel %vm40_vm0, %v19_v2, 0  ;;  %v21_v11 = vld [vmem:[%s1722_s1 + $0x20] sm:$0xff]  ;;  %v22_v12 = vld [vmem:[%s1722_s1 + $0x28] sm:$0xff] }
   0x3   :  { %v96_v7 = vand.u32 4294901760, %v48_v3  ;;  %v99_v8 = vand.u32 4294901760, %v51_v4  ;;  %v57_v9 = vsel %vm40_vm0, %v20_v5, 0  ;;  %v102_v10 = vand.u32 4294901760, %v54_v6  ;;  %v15_v18 = vld [vmem:[%s1721_s0] sm:$0xff] }
   0x4   :  { %v105_v13 = vand.u32 4294901760, %v57_v9  ;;  %v60_v16 = vsel %vm40_vm0, %v21_v11, 0  ;;  %v63_v17 = vsel %vm40_vm0, %v22_v12, 0 }
   0x5   :  { %v1458_v14 = vpack.c.bf16 %v99_v8, %v96_v7 }
   0x6   :  { %v1460_v15 = vpack.c.bf16 %v105_v13, %v102_v10 }
   0x7   :  { %1175 = vmatprep.subr.bf16.mxu1 %v1458_v14  ;;  %1271 = vmatprep.subr.bf16.mxu0 %v1458_v14 }
   0x8   :  { %1177 = vmatpush3.bf16.xpose.msra.mxu1 %v1458_v14  ;;  %1273 = vmatpush3.bf16.xpose.msra.mxu0 %v1458_v14 }
   0x9   :  { %8 = vsyncpa [#allocation3], 0  ;;  %1179 = vmatprep.subr.bf16.mxu1 %v1460_v15  ;;  %1275 = vmatprep.subr.bf16.mxu0 %v1460_v15  ;;  %v108_v19 = vand.u32 4294901760, %v60_v16  ;;  %v111_v20 = vand.u32 4294901760, %v63_v17  ;;  %v23_v21 = vld [vmem:[%s1722_s1 + $0x30] sm:$0xff]  ;;  %v24_v22 = vld [vmem:[%s1722_s1 + $0x38] sm:$0xff]  ;;  %v1518_v45 = vsub.f32 %v48_v3, %v96_v7  ;;  %v1520_v46 = vsub.f32 %v51_v4, %v99_v8 }
   0xa   :  { %v42_v23 = vsel %vm40_vm0, %v15_v18, 0  ;;  %v66_v26 = vsel %vm40_vm0, %v23_v21, 0  ;;  %v69_v27 = vsel %vm40_vm0, %v24_v22, 0  ;;  %v25_v32 = vld [vmem:[%s1722_s1 + $0x40] sm:$0xff]  ;;  %v26_v33 = vld [vmem:[%s1722_s1 + $0x48] sm:$0xff]  ;;  %v27_v41 = vld [vmem:[%s1722_s1 + $0x50] sm:$0xff]  ;;  %v1522_v47 = vsub.f32 %v54_v6, %v102_v10 }
   0xb   :  { %v1480_v24 = vand.u32 4294901760, %v42_v23  ;;  %v1482_v25 = vpack.c.bf16 %v111_v20, %v108_v19  ;;  %v114_v30 = vand.u32 4294901760, %v66_v26  ;;  %v117_v31 = vand.u32 4294901760, %v69_v27  ;;  %v28_v42 = vld [vmem:[%s1722_s1 + $0x58] sm:$0xff]  ;;  %v29_v61 = vld [vmem:[%s1722_s1 + $0x60] sm:$0xff]  ;;  %v30_v62 = vld [vmem:[%s1722_s1 + $0x68] sm:$0xff] }
   0xc   :  { %v72_v37 = vsel %vm40_vm0, %v25_v32, 0  ;;  %v75_v38 = vsel %vm40_vm0, %v26_v33, 0  ;;  %v78_v44 = vsel %vm40_vm0, %v27_v41, 0  ;;  %v1524_v48 = vsub.f32 %v57_v9, %v105_v13  ;;  %v31_v9 = vld [vmem:[%s1722_s1 + $0x70] sm:$0xff]  ;;  %v32_v10 = vld [vmem:[%s1722_s1 + $0x78] sm:$0xff]  ;;  %v16_v12 = vld [vmem:[%s1721_s0 + $0x8] sm:$0xff] }
   0xd   :  { %v1487_v28 = vsub.f32 %v42_v23, %v1480_v24  ;;  %v1501_v36 = vpack.c.bf16 %v117_v31, %v114_v30  ;;  %v120_v39 = vand.u32 4294901760, %v72_v37  ;;  %v123_v40 = vand.u32 4294901760, %v75_v38 }
   0xe   :  { %v81_v49 = vsel %vm40_vm0, %v28_v42, 0  ;;  %v1527_v50 = vsub.f32 %v60_v16, %v108_v19  ;;  %v1529_v51 = vsub.f32 %v63_v17, %v111_v20  ;;  %v1533_v52 = vpack.c.bf16 %v1520_v46, %v1518_v45 }
   0xf   :  { %v178_v29 = vand.u32 4294901760, %v1487_v28  ;;  %v1515_v43 = vpack.c.bf16 %v123_v40, %v120_v39  ;;  %v1537_v53 = vpack.c.bf16 %v1524_v48, %v1522_v47  ;;  %v126_v54 = vand.u32 4294901760, %v78_v44 }
  0x10   :  { %1181 = vmatpush3.bf16.xpose.msra.mxu1 %v1460_v15  ;;  %1277 = vmatpush3.bf16.xpose.msra.mxu0 %v1460_v15  ;;  %v1541_v55 = vsub.f32 %v66_v26, %v114_v30  ;;  %v1543_v56 = vsub.f32 %v69_v27, %v117_v31  ;;  %v129_v57 = vand.u32 4294901760, %v81_v49  ;;  %v1547_v58 = vsub.f32 %v72_v37, %v120_v39 }
  0x11   :  { %1183 = vmatprep.subr.bf16.mxu1 %v1482_v25  ;;  %1279 = vmatprep.subr.bf16.mxu0 %v1482_v25  ;;  %v179_v34 = vsub.f32 %v1487_v28, %v178_v29  ;;  %v1549_v59 = vsub.f32 %v75_v38, %v123_v40  ;;  %v1553_v60 = vpack.c.bf16 %v1529_v51, %v1527_v50  ;;  %v84_v2 = vsel %vm40_vm0, %v29_v61, 0 }
  0x12   :  { %1101 = vmatprep.mubr.f32.mxu0 %v178_v29  ;;  %v1563_v63 = vpack.c.bf16 %v1543_v56, %v1541_v55  ;;  %v1569_v1 = vpack.c.bf16 %v129_v57, %v126_v54  ;;  %v87_v3 = vsel %vm40_vm0, %v30_v62, 0  ;;  %v1573_v4 = vsub.f32 %v78_v44, %v126_v54 }
  0x13   :  { %v180_v35 = vand.u32 4294901760, %v179_v34  ;;  %v1567_v0 = vpack.c.bf16 %v1549_v59, %v1547_v58  ;;  %v1575_v5 = vsub.f32 %v81_v49, %v129_v57  ;;  %v132_v7 = vand.u32 4294901760, %v84_v2 }
  0x14   :  { %v135_v8 = vand.u32 4294901760, %v87_v3  ;;  %v90_v13 = vsel %vm40_vm0, %v31_v9, 0  ;;  %v93_v16 = vsel %vm40_vm0, %v32_v10, 0  ;;  %v45_v19 = vsel %vm40_vm0, %v16_v12, 0 }
  0x15   :  { %996 = vmatprep.mubr.f32.mxu1 %v180_v35  ;;  %v1581_v6 = vpack.c.bf16 %v1575_v5, %v1573_v4  ;;  %v1598_v17 = vsub.f32 %v84_v2, %v132_v7  ;;  %v138_v21 = vand.u32 4294901760, %v90_v13  ;;  %v141_v22 = vand.u32 4294901760, %v93_v16 }
  0x16   :  { %v1591_v11 = vpack.c.bf16 %v135_v8, %v132_v7  ;;  %v1600_v18 = vsub.f32 %v87_v3, %v135_v8  ;;  %v199_v23 = vand.u32 4294901760, %v1518_v45  ;;  %v206_v26 = vand.u32 4294901760, %v1520_v46 }
  0x17   :  { %v1613_v27 = vand.u32 4294901760, %v45_v19  ;;  %v1615_v29 = vpack.c.bf16 %v141_v22, %v138_v21  ;;  %v1619_v32 = vsub.f32 %v90_v13, %v138_v21  ;;  %v1621_v33 = vsub.f32 %v93_v16, %v141_v22 }
  0x18   :  { %1185 = vmatpush3.bf16.xpose.msra.mxu1 %v1482_v25  ;;  %1281 = vmatpush3.bf16.xpose.msra.mxu0 %v1482_v25  ;;  %v1607_v20 = vpack.c.bf16 %v1600_v18, %v1598_v17  ;;  %v200_v30 = vsub.f32 %v1518_v45, %v199_v23  ;;  %v207_v31 = vsub.f32 %v1520_v46, %v206_v26  ;;  %v213_v39 = vand.u32 4294901760, %v1522_v47 }
  0x19   :  { %1187 = vmatprep.subr.bf16.mxu1 %v1501_v36  ;;  %1283 = vmatprep.subr.bf16.mxu0 %v1501_v36  ;;  %v1624_v34 = vsub.f32 %v45_v19, %v1613_v27  ;;  %v1630_v35 = vpack.c.bf16 %v1621_v33, %v1619_v32  ;;  %v220_v40 = vand.u32 4294901760, %v1524_v48  ;;  %v1302_v44 = vpack.c.bf16 %v206_v26, %v199_v23 }
  0x1a   :  { %v201_v37 = vand.u32 4294901760, %v200_v30  ;;  %v208_v38 = vand.u32 4294901760, %v207_v31  ;;  %v214_v45 = vsub.f32 %v1522_v47, %v213_v39  ;;  %v227_v61 = vand.u32 4294901760, %v1527_v50 }
  0x1b   :  { %v188_v41 = vand.u32 4294901760, %v1624_v34  ;;  %v221_v46 = vsub.f32 %v1524_v48, %v220_v40  ;;  %v234_v62 = vand.u32 4294901760, %v1529_v51  ;;  %v1306_v7 = vpack.c.bf16 %v220_v40, %v213_v39 }
  0x1c   :  { %v1206_v42 = vpack.c.bf16 %v208_v38, %v201_v37  ;;  %v215_v54 = vand.u32 4294901760, %v214_v45  ;;  %v228_v47 = vsub.f32 %v1527_v50, %v227_v61  ;;  %v241_v10 = vand.u32 4294901760, %v1541_v55 }
  0x1d   :  { %v189_v49 = vsub.f32 %v1624_v34, %v188_v41  ;;  %v222_v57 = vand.u32 4294901760, %v221_v46  ;;  %v235_v48 = vsub.f32 %v1529_v51, %v234_v62  ;;  %v248_v12 = vand.u32 4294901760, %v1543_v56 }
  0x1e   :  { %v229_v8 = vand.u32 4294901760, %v228_v47  ;;  %v1310_v50 = vpack.c.bf16 %v234_v62, %v227_v61  ;;  %v242_v51 = vsub.f32 %v1541_v55, %v241_v10  ;;  %v255_v22 = vand.u32 4294901760, %v1547_v58 }
  0x1f   :  { %v190_v2 = vand.u32 4294901760, %v189_v49  ;;  %v1210_v3 = vpack.c.bf16 %v222_v57, %v215_v54  ;;  %v236_v9 = vand.u32 4294901760, %v235_v48  ;;  %v249_v16 = vsub.f32 %v1543_v56, %v248_v12 }
  0x20   :  { %1189 = vmatpush3.bf16.xpose.msra.mxu1 %v1501_v36  ;;  %1285 = vmatpush3.bf16.xpose.msra.mxu0 %v1501_v36  ;;  %v243_v19 = vand.u32 4294901760, %v242_v51  ;;  %v262_v23 = vand.u32 4294901760, %v1549_v59  ;;  %v1314_v30 = vpack.c.bf16 %v248_v12, %v241_v10  ;;  %v256_v31 = vsub.f32 %v1547_v58, %v255_v22 }
  0x21   :  { %1191 = vmatprep.subr.bf16.mxu1 %v1515_v43  ;;  %1287 = vmatprep.subr.bf16.mxu0 %v1515_v43  ;;  %v1214_v13 = vpack.c.bf16 %v236_v9, %v229_v8  ;;  %v250_v21 = vand.u32 4294901760, %v249_v16  ;;  %v269_v38 = vand.u32 4294901760, %v1573_v4  ;;  %v276_v39 = vand.u32 4294901760, %v1575_v5 }
  0x22   :  { %v263_v37 = vsub.f32 %v1549_v59, %v262_v23  ;;  %v257_v55 = vand.u32 4294901760, %v256_v31  ;;  %v283_v45 = vand.u32 4294901760, %v1598_v17  ;;  %v290_v46 = vand.u32 4294901760, %v1600_v18 }
  0x23   :  { %v1218_v26 = vpack.c.bf16 %v250_v21, %v243_v19  ;;  %v1322_v54 = vpack.c.bf16 %v276_v39, %v269_v38  ;;  %v297_v62 = vand.u32 4294901760, %v1619_v32 }
  0x24   :  { %v264_v56 = vand.u32 4294901760, %v263_v37  ;;  %v284_v57 = vsub.f32 %v1598_v17, %v283_v45  ;;  %v291_v61 = vsub.f32 %v1600_v18, %v290_v46 }
  0x25   :  { %v298_v47 = vsub.f32 %v1619_v32, %v297_v62 }
  0x26   :  { %v1222_v40 = vpack.c.bf16 %v264_v56, %v257_v55 }
  0x27   :  { %v299_v17 = vand.u32 4294901760, %v298_v47 }
  0x28   :  { %1193 = vmatpush3.bf16.xpose.msra.mxu1 %v1515_v43  ;;  %1289 = vmatpush3.bf16.xpose.msra.mxu0 %v1515_v43 }
  0x29   :  { %1195 = vmatprep.subr.bf16.mxu1 %v1569_v1  ;;  %1291 = vmatprep.subr.bf16.mxu0 %v1569_v1 }
  0x30   :  { %1197 = vmatpush3.bf16.xpose.msra.mxu1 %v1569_v1  ;;  %1293 = vmatpush3.bf16.xpose.msra.mxu0 %v1569_v1 }
  0x31   :  { %1199 = vmatprep.subr.bf16.mxu1 %v1591_v11  ;;  %1295 = vmatprep.subr.bf16.mxu0 %v1591_v11 }
  0x38   :  { %1201 = vmatpush3.bf16.xpose.msra.mxu1 %v1591_v11  ;;  %1297 = vmatpush3.bf16.xpose.msra.mxu0 %v1591_v11 }
  0x39   :  { %1203 = vmatprep.subr.bf16.mxu1 %v1615_v29  ;;  %1299 = vmatprep.subr.bf16.mxu0 %v1615_v29 }
  0x40   :  { %1205 = vmatpush3.bf16.xpose.msra.mxu1 %v1615_v29  ;;  %1301 = vmatpush3.bf16.xpose.msra.mxu0 %v1615_v29 }
  0x41   :  { %1207 = vmatprep.subr.bf16.mxu1 %v1206_v42  ;;  %1303 = vmatprep.subr.bf16.mxu0 %v1302_v44 }
  0x47   :  { %997 = vmatmul.mubr.f32.vlgmr.msra.gmra.mrb[0].mxu1 %v190_v2  ;;  %1102 = vmatmul.mubr.f32.vlgmr.msra.gmra.mrb[0].mxu0 %v188_v41  ;;  %v1318_v41 = vpack.c.bf16 %v262_v23, %v255_v22  ;;  %v304_v2 = vand.u32 4294901760, %v1621_v33 }
  0x48   :  { %1209 = vmatpush3.bf16.xpose.msra.mxu1 %v1206_v42  ;;  %1305 = vmatpush3.bf16.xpose.msra.mxu0 %v1302_v44  ;;  %v270_v42 = vsub.f32 %v1573_v4, %v269_v38  ;;  %v277_v44 = vsub.f32 %v1575_v5, %v276_v39  ;;  %v285_v4 = vand.u32 4294901760, %v284_v57  ;;  %v292_v5 = vand.u32 4294901760, %v291_v61 }
  0x49   :  { %1211 = vmatprep.subr.bf16.mxu1 %v1210_v3  ;;  %1307 = vmatprep.subr.bf16.mxu0 %v1306_v7  ;;  %v305_v48 = vsub.f32 %v1621_v33, %v304_v2  ;;  %v1330_v9 = vpack.c.bf16 %v304_v2, %v297_v62 }
  0x4a   :  { %1031 = vmatprep.mubr.f32.mxu1 %v1480_v24  ;;  %1136 = vmatprep.mubr.f32.mxu0 %v1480_v24  ;;  %v271_v58 = vand.u32 4294901760, %v270_v42  ;;  %v278_v59 = vand.u32 4294901760, %v277_v44 }
  0x4b   :  { %v306_v18 = vand.u32 4294901760, %v305_v48 }
  0x4c   :  { %v1226_v49 = vpack.c.bf16 %v278_v59, %v271_v58 }
  0x4d   :  { %v1234_v8 = vpack.c.bf16 %v306_v18, %v299_v17 }
  0x50   :  { %1213 = vmatpush3.bf16.xpose.msra.mxu1 %v1210_v3  ;;  %1309 = vmatpush3.bf16.xpose.msra.mxu0 %v1306_v7  ;;  %v1230_v3 = vpack.c.bf16 %v292_v5, %v285_v4  ;;  %v1326_v7 = vpack.c.bf16 %v290_v46, %v283_v45 }
  0x51   :  { %1215 = vmatprep.subr.bf16.mxu1 %v1214_v13  ;;  %1311 = vmatprep.subr.bf16.mxu0 %v1310_v50 }
  0x58   :  { %1217 = vmatpush3.bf16.xpose.msra.mxu1 %v1214_v13  ;;  %1313 = vmatpush3.bf16.xpose.msra.mxu0 %v1310_v50 }
  0x59   :  { %1219 = vmatprep.subr.bf16.mxu1 %v1218_v26  ;;  %1315 = vmatprep.subr.bf16.mxu0 %v1314_v30 }
  0x60   :  { %1221 = vmatpush3.bf16.xpose.msra.mxu1 %v1218_v26  ;;  %1317 = vmatpush3.bf16.xpose.msra.mxu0 %v1314_v30 }
  0x61   :  { %1223 = vmatprep.subr.bf16.mxu1 %v1222_v40  ;;  %1319 = vmatprep.subr.bf16.mxu0 %v1318_v41 }
  0x68   :  { %1225 = vmatpush3.bf16.xpose.msra.mxu1 %v1222_v40  ;;  %1321 = vmatpush3.bf16.xpose.msra.mxu0 %v1318_v41 }
  0x69   :  { %1227 = vmatprep.subr.bf16.mxu1 %v1226_v49  ;;  %1323 = vmatprep.subr.bf16.mxu0 %v1322_v54 }
  0x70   :  { %1229 = vmatpush3.bf16.xpose.msra.mxu1 %v1226_v49  ;;  %1325 = vmatpush3.bf16.xpose.msra.mxu0 %v1322_v54 }
  0x71   :  { %1231 = vmatprep.subr.bf16.mxu1 %v1230_v3  ;;  %1327 = vmatprep.subr.bf16.mxu0 %v1326_v7 }
  0x78   :  { %1233 = vmatpush3.bf16.xpose.msra.mxu1 %v1230_v3  ;;  %1329 = vmatpush3.bf16.xpose.msra.mxu0 %v1326_v7 }
  0x79   :  { %1235 = vmatprep.subr.bf16.mxu1 %v1234_v8  ;;  %1331 = vmatprep.subr.bf16.mxu0 %v1330_v9 }
  0x80   :  { %1237 = vmatpush3.bf16.xpose.msra.mxu1 %v1234_v8  ;;  %1333 = vmatpush3.bf16.xpose.msra.mxu0 %v1330_v9 }
  0x81   :  { %1239 = vmatprep.subr.bf16.mxu1 %v1533_v52  ;;  %1335 = vmatprep.subr.bf16.mxu0 %v1458_v14 }
  0x87   :  { %1032 = vmatmul.mubr.f32.vlgmr.msra.gmra.mrb[0].mxu1 %v1613_v27  ;;  %1137 = vmatmul.mubr.f32.vlgmr.msra.gmra.mrb[0].mxu0 %v1613_v27 }
  0x88   :  { %1241 = vmatpush3.bf16.xpose.msra.mxu1 %v1533_v52  ;;  %1337 = vmatpush3.bf16.xpose.msra.mxu0 %v1458_v14  ;;  %v855_v14 = vld [vmem:[%s1723_s2] ss:$0 sm:$0xff]  ;;  %s1413_s2 = smov [#allocation2]  }
  0x89   :  { %1243 = vmatprep.subr.bf16.mxu1 %v1537_v53  ;;  %1339 = vmatprep.subr.bf16.mxu0 %v1460_v15  ;;  %s844_s21 = sshll.u32 %s1413_s2, 4  ;;  %s845_s21 = int_to_ptr.vmem [resolvable:$true] %s844_s21 }
  0x8a   :  { %1066 = vmatprep.mubr.f32.mxu1 %v1487_v28  ;;  %1171 = vmatprep.mubr.f32.mxu0 %v1480_v24  ;;  %s1389_s22 = scalar_lea.vmem %s845_s21, 256  ;;  %p1394_p1 = scmp.lt.s32.totalorder %s845_s21, %s845_s21 }
  0x8b   :  { %p1390_p0 = scmp.ne.s32.totalorder %s845_s21, %s1389_s22  ;;  %p1395_p2 = scmp.lt.s32.totalorder %s1389_s22, %s1389_s22 }
  0x8d   :  { %p1396_p3 = por %p1395_p2, %p1394_p1 }
  0x8f   :  { %p1397_p4 = pnand %p1396_p3, %p1390_p0 }
  0x90   :  { %1245 = vmatpush3.bf16.xpose.msra.mxu1 %v1537_v53  ;;  %1341 = vmatpush3.bf16.xpose.msra.mxu0 %v1460_v15 }
  0x91   :  { %1247 = vmatprep.subr.bf16.mxu1 %v1553_v60  ;;  %1343 = vmatprep.subr.bf16.mxu0 %v1482_v25 }
  0x98   :  { %1249 = vmatpush3.bf16.xpose.msra.mxu1 %v1553_v60  ;;  %1345 = vmatpush3.bf16.xpose.msra.mxu0 %v1482_v25 }
  0x99   :  { %1251 = vmatprep.subr.bf16.mxu1 %v1563_v63  ;;  %1347 = vmatprep.subr.bf16.mxu0 %v1501_v36 }
  0xa0   :  { %1253 = vmatpush3.bf16.xpose.msra.mxu1 %v1563_v63  ;;  %1349 = vmatpush3.bf16.xpose.msra.mxu0 %v1501_v36 }
  0xa1   :  { %1255 = vmatprep.subr.bf16.mxu1 %v1567_v0  ;;  %1351 = vmatprep.subr.bf16.mxu0 %v1515_v43 }
  0xa8   :  { %1257 = vmatpush3.bf16.xpose.msra.mxu1 %v1567_v0  ;;  %1353 = vmatpush3.bf16.xpose.msra.mxu0 %v1515_v43 }
  0xa9   :  { %1259 = vmatprep.subr.bf16.mxu1 %v1581_v6  ;;  %1355 = vmatprep.subr.bf16.mxu0 %v1569_v1 }
  0xb0   :  { %1261 = vmatpush3.bf16.xpose.msra.mxu1 %v1581_v6  ;;  %1357 = vmatpush3.bf16.xpose.msra.mxu0 %v1569_v1 }
  0xb1   :  { %1263 = vmatprep.subr.bf16.mxu1 %v1607_v20  ;;  %1359 = vmatprep.subr.bf16.mxu0 %v1591_v11 }
  0xb8   :  { %1265 = vmatpush3.bf16.xpose.msra.mxu1 %v1607_v20  ;;  %1361 = vmatpush3.bf16.xpose.msra.mxu0 %v1591_v11 }
  0xb9   :  { %1267 = vmatprep.subr.bf16.mxu1 %v1630_v35  ;;  %1363 = vmatprep.subr.bf16.mxu0 %v1615_v29 }
  0xc0   :  { %1269 = vmatpush3.bf16.xpose.msra.mxu1 %v1630_v35  ;;  %1365 = vmatpush3.bf16.xpose.msra.mxu0 %v1615_v29 }
  0xc7   :  { %1067 = vmatmul.mubr.f32.vlgmr.msra.gmra.mrb[0].mxu1 %v1624_v34  ;;  %1172 = vmatmul.mubr.f32.vlgmr.msra.gmra.mrb[0].mxu0 %v1613_v27 }
 0x19a   :  { %v1068_v15 = vpop.f32.mrb[0].mxu1  ;;  %v1173_v24 = vpop.f32.mrb[0].mxu0 }
 0x19b   :  { %v1366_v25 = vadd.f32 %v1068_v15, %v855_v14  ;;  %v453_v28 = vpop.f32.mrb[1].mxu1  ;;  %v769_v36 = vpop.f32.mrb[1].mxu0 }
 0x19c   :  { %v1368_v43 = vadd.f32 %v855_v14, %v453_v28 }
 0x19d   :  { %v1367_v52 = vadd.f32 %v1366_v25, %v1173_v24 }
 0x19e   :  { %v1369_v53 = vadd.f32 %v1368_v43, %v769_v36 }
 0x19f   :  { %v782_v60 = vmul.f32 0.70710677, %v1367_v52  ;;  %v780_v47 = vmul.f32 0.5, %v1367_v52 }
 0x1a0   :  { %v781_v63 = vmul.f32 0.70710677, %v1369_v53  ;;  %v779_v18 = vmul.f32 0.5, %v1369_v53 }
 0x1a1   :  { %v784_v0 = vand.u32 2147483647, %v782_v60  ;;  %vm828_vm1 = vcmp.ge.f32.partialorder %v782_v60, 0.0 }
 0x1a2   :  { %v783_v1 = vand.u32 2147483647, %v781_v63  ;;  %vm827_vm2 = vcmp.ge.f32.partialorder %v781_v63, 0.0 }
 0x1a3   :  { %v786_v6 = vmul.f32 0.3275911, %v784_v0  ;;  %v816_v34 = vmul.f32 %v784_v0, %v784_v0 }
 0x1a4   :  { %v785_v11 = vmul.f32 0.3275911, %v783_v1  ;;  %v815_v12 = vmul.f32 %v783_v1, %v783_v1 }
 0x1a5   :  { %v788_v20 = vadd.f32 1.0, %v786_v6  ;;  %v818_v51 = vsub.f32 0.0, %v816_v34 }
 0x1a6   :  { %v787_v27 = vadd.f32 1.0, %v785_v11  ;;  %v817_v21 = vsub.f32 0.0, %v815_v12 }
 0x1a7   :  { %1381 = vrcp.f32 %v788_v20  ;;  %v821_v26 = vmul.f32 1.442695, %v818_v51 }
 0x1a8   :  { %1383 = vrcp.f32 %v787_v27  ;;  %v819_v37 = vmul.f32 1.442695, %v817_v21 }
 0x1a9   :  { %1385 = vpow2.f32 %v821_v26 }
 0x1aa   :  { %1387 = vpow2.f32 %v819_v37 }
 0x1b1   :  { %v1382_v29 = vpop.eup %1381 }
 0x1b2   :  { %v1384_v32 = vpop.eup %1383  ;;  %v792_v33 = vmul.f32 %v1382_v29, %v788_v20 }
 0x1b3   :  { %v791_v35 = vmul.f32 %v1384_v32, %v787_v27  ;;  %v1386_v49 = vpop.eup %1385 }
 0x1b4   :  { %v794_v10 = vsub.f32 2.0, %v792_v33  ;;  %v1388_v57 = vpop.eup %1387 }
 0x1b5   :  { %v793_v13 = vsub.f32 2.0, %v791_v35 }
 0x1b6   :  { %v796_v50 = vmul.f32 %v1382_v29, %v794_v10 }
 0x1b7   :  { %v795_v16 = vmul.f32 %v1384_v32, %v793_v13 }
 0x1b8   :  { %v798_v19 = vmul.f32 1.0614054, %v796_v50 }
 0x1b9   :  { %v797_v22 = vmul.f32 1.0614054, %v795_v16 }
 0x1ba   :  { %v800_v23 = vadd.f32 -1.4531521, %v798_v19 }
 0x1bb   :  { %v799_v30 = vadd.f32 -1.4531521, %v797_v22 }
 0x1bc   :  { %v802_v31 = vmul.f32 %v800_v23, %v796_v50 }
 0x1bd   :  { %v801_v55 = vmul.f32 %v799_v30, %v795_v16 }
 0x1be   :  { %v804_v56 = vadd.f32 1.4214138, %v802_v31 }
 0x1bf   :  { %v803_v38 = vadd.f32 1.4214138, %v801_v55 }
 0x1c0   :  { %v806_v39 = vmul.f32 %v804_v56, %v796_v50 }
 0x1c1   :  { %v805_v40 = vmul.f32 %v803_v38, %v795_v16 }
 0x1c2   :  { %v808_v41 = vadd.f32 -0.28449672, %v806_v39 }
 0x1c3   :  { %v807_v42 = vadd.f32 -0.28449672, %v805_v40 }
 0x1c4   :  { %v810_v44 = vmul.f32 %v808_v41, %v796_v50 }
 0x1c5   :  { %v809_v58 = vmul.f32 %v807_v42, %v795_v16 }
 0x1c6   :  { %v812_v59 = vadd.f32 0.2548296, %v810_v44 }
 0x1c7   :  { %v811_v45 = vadd.f32 0.2548296, %v809_v58 }
 0x1c8   :  { %v814_v46 = vmul.f32 %v812_v59, %v796_v50 }
 0x1c9   :  { %v813_v54 = vmul.f32 %v811_v45, %v795_v16 }
 0x1ca   :  { %v824_v61 = vmul.f32 %v1386_v49, %v814_v46 }
 0x1cb   :  { %v823_v4 = vmul.f32 %v1388_v57, %v813_v54 }
 0x1cc   :  { %v826_v5 = vsub.f32 1.0, %v824_v61 }
 0x1cd   :  { %v825_v62 = vsub.f32 1.0, %v823_v4 }
 0x1ce   :  { %v830_v2 = vsub.f32 0.0, %v826_v5 }
 0x1cf   :  { %v829_v3 = vsub.f32 0.0, %v825_v62 }
 0x1d0   :  { %v832_v7 = vsel %vm828_vm1, %v826_v5, %v830_v2 }
 0x1d1   :  { %v834_v48 = vadd.f32 1.0, %v832_v7  ;;  %v831_v17 = vsel %vm827_vm2, %v825_v62, %v829_v3 }
 0x1d2   :  { %v833_v8 = vadd.f32 1.0, %v831_v17 }
 0x1d3   :  { %v836_v9 = vmul.f32 %v834_v48, %v780_v47 }
 0x1d4   :  { %v835_v14 = vmul.f32 %v833_v8, %v779_v18 }
 0x1d5   :  { %838 = vst [vmem:[#allocation2 + $0x8] sm:$0xff] %v836_v9 }
 0x1d6   :  { %837 = vst [vmem:[#allocation2] sm:$0xff] %v835_v14 }
 0x1d7   :  { %1400 = shalt.err (!%p1397_p4)
}
 0x1d8   :  { %s1401_s25 = scalar_lea.hbm %s1724_s3, 256 }
 0x1d9   :  { %p1402_p5 = scmp.ne.s32.totalorder %s1724_s3, %s1401_s25  ;;  %p1405_p6 = scmp.lt.u32.totalorder %s1401_s25, %s1724_s3 }
 0x1db   :  { %p1407_p7 = pnand %p1405_p6, %p1402_p5 }
 0x1dd   :  { %1410 = shalt.err (!%p1407_p7)
}
 0x1de   :  { %s1414_s30 = smov 128   ;;  %s1415_s4 = smov 8  }
 0x1df   :  { %850 = dma.vmem_to_hbm [thread:$0]  %s845_s21, 256, %s1724_s3, [#allocation3], %s1414_s30, %s1414_s30, %s1415_s4  }
 0x1e0   :  { %1411 = dma.done.wait [#allocation3], 256  }
 0x1e1   :  { %1412 = vsyncadd [#allocation3], 4294967040 }
 0x1e2   :  { %854 = vsyncpa [#allocation3], 1 }

</bundles_post_ra>
